<compile_context>
chip_gen: v7x
topology: tpu7x:2x2x1
jax: 0.10.0
libtpu: 0.0.40
codegen_flags: <defaults>
</compile_context>

<pallas_src>
import jax
import jax.numpy as jnp
import numpy as np
from jax.experimental import pallas as pl
from jax.experimental.pallas import tpu as pltpu

_EPS = 1e-5


def _round_up(x, m):
    return (x + m - 1) // m * m


# ----------------------------- fused kernel ---------------------------------

def head_kernel(x_ref, w1_ref, t1_ref,
                sA_ref, tA_ref, wa_ref, tB_ref, wb_ref, bb_ref,
                wf_ref, tf_ref, wo_ref, bo_ref, out_ref):
    """Fused SkipConnectionRetrievalHead forward for one batch tile.

    x_ref:  [TN, INp]                input tile (f32)
    w1/t1:  [INp, Hp], [1, Hp]       fc1 weight (bn1 scale + weight folded, bf16) / shift
    sA/tA:  [NB, 1, Hp]              per-skipblock BN1 scale / shift
    wa:     [NB, Hp, HBp]            per-skipblock linear1 (weight-norm + BN2-scale folded, bf16)
    tB:     [NB, 1, HBp]             per-skipblock folded BN2 shift (+ linear1 bias)
    wb:     [NB, HBp, Hp]            per-skipblock linear2 (weight-norm folded, bf16)
    bb:     [NB, 1, Hp]              per-skipblock linear2 bias
    wf/tf:  [Hp, Hp], [1, Hp]        fc_final (bn_final folded) / shift
    wo/bo:  [Hp, OUTp], [1, OUTp]    output layer
    out:    [TN, OUTp]
    """
    cdt = w1_ref.dtype  # matmul-input dtype (bf16); accumulation stays f32

    x = x_ref[...]

    # fc1 (+ folded bn1) -> relu.  dropout = identity in eval mode.
    h = jnp.dot(x.astype(cdt), w1_ref[...], preferred_element_type=jnp.float32)
    h = jnp.maximum(h + t1_ref[...], 0.0)

    num_blocks = sA_ref.shape[0]
    for k in range(num_blocks):  # static unroll over skipblocks
        # SkipBlock: bn -> relu -> linear1 (bn2 scale folded) -> relu -> linear2 -> skip
        u = jnp.maximum(h * sA_ref[k] + tA_ref[k], 0.0)
        m = jnp.dot(u.astype(cdt), wa_ref[k], preferred_element_type=jnp.float32)
        w = jnp.maximum(m + tB_ref[k], 0.0)
        h = h + jnp.dot(w.astype(cdt), wb_ref[k],
                        preferred_element_type=jnp.float32) + bb_ref[k]

    # fc_final (+ folded bn_final) -> relu
    z = jnp.dot(h.astype(cdt), wf_ref[...], preferred_element_type=jnp.float32)
    z = jnp.maximum(z + tf_ref[...], 0.0)

    # output_layer
    o = jnp.dot(z.astype(cdt), wo_ref[...], preferred_element_type=jnp.float32)
    out_ref[...] = (o + bo_ref[...]).astype(out_ref.dtype)


# --------------------------- param folding glue ------------------------------

def _bn_scale_shift(gamma, beta, mean, var):
    s = gamma / jnp.sqrt(var + _EPS)
    return s, beta - mean * s


def _fold_weight_norm(v, g):
    # nn.utils.weight_norm(dim=0): per-output-row norm over the input dim.
    norm = jnp.sqrt(jnp.sum(v * v, axis=1, keepdims=True))
    return g[:, None] * v / jnp.maximum(norm, 1e-12)


def _pad2(a, rows, cols):
    return jnp.pad(a, ((0, rows - a.shape[0]), (0, cols - a.shape[1])))


def head_forward(x, params, *, compute_dtype=jnp.bfloat16, max_tile_n=512):
    N, in_features = x.shape
    H = params["fc1_w"].shape[0]
    Hb = params["blocks"][0]["v1"].shape[0]
    out_features = params["out_w"].shape[0]
    nb = len(params["blocks"])

    in_p = _round_up(in_features, 128)
    h_p = _round_up(H, 128)
    hb_p = _round_up(Hb, 128)
    out_p = _round_up(out_features, 128)

    # ---- one-time folding (plain JAX) ----
    s1, t1 = _bn_scale_shift(params["bn1_g"], params["bn1_b"],
                             params["bn1_m"], params["bn1_v"])
    w1 = params["fc1_w"].T * s1[None, :]            # bn1 scale -> fc1 columns
    t1 = t1 + params["fc1_b"] * s1                  # fc1 bias -> bn1 shift

    sA_l, tA_l, wa_l, tB_l, wb_l, bb_l = [], [], [], [], [], []
    for blk in params["blocks"]:
        sA, tA = _bn_scale_shift(blk["bnA_g"], blk["bnA_b"], blk["bnA_m"], blk["bnA_v"])
        sB, tB = _bn_scale_shift(blk["bnB_g"], blk["bnB_b"], blk["bnB_m"], blk["bnB_v"])
        wa = _fold_weight_norm(blk["v1"], blk["g1"]).T * sB[None, :]  # [H, Hb]
        tB = tB + blk["b1"] * sB
        wb = _fold_weight_norm(blk["v2"], blk["g2"]).T                # [Hb, H]
        sA_l.append(_pad2(sA.reshape(1, -1), 1, h_p))
        tA_l.append(_pad2(tA.reshape(1, -1), 1, h_p))
        wa_l.append(_pad2(wa, h_p, hb_p).astype(compute_dtype))
        tB_l.append(_pad2(tB.reshape(1, -1), 1, hb_p))
        wb_l.append(_pad2(wb, hb_p, h_p).astype(compute_dtype))
        bb_l.append(_pad2(blk["b2"].reshape(1, -1), 1, h_p))

    sf, tf = _bn_scale_shift(params["bnf_g"], params["bnf_b"],
                             params["bnf_m"], params["bnf_v"])
    wf = params["fcf_w"].T * sf[None, :]
    tf = tf + params["fcf_b"] * sf
    wo = params["out_w"].T
    bo = params["out_b"]

    # ---- tile selection (keep resident weights + double-buffered IO in VMEM) ----
    w_itemsize = np.dtype(compute_dtype).itemsize
    w_bytes = (in_p * h_p + nb * (h_p * hb_p + hb_p * h_p)
               + h_p * h_p + h_p * out_p) * w_itemsize
    tile_n = min(max_tile_n, _round_up(N, 8))
    vmem_budget = 40 * 1024 * 1024  # safe on v7x (64 MiB VMEM/TC) and v5e/v6e
    while tile_n > 8 and (w_bytes + 4 * tile_n * (in_p + out_p) * 4
                          + 4 * tile_n * max(h_p, hb_p) * 4) > vmem_budget:
        tile_n //= 2
    n_p = _round_up(N, tile_n)

    x_p = jnp.pad(x, ((0, n_p - N), (0, in_p - in_features)))

    args = (
        x_p,
        _pad2(w1, in_p, h_p).astype(compute_dtype),
        _pad2(t1.reshape(1, -1), 1, h_p),
        jnp.stack(sA_l), jnp.stack(tA_l), jnp.stack(wa_l),
        jnp.stack(tB_l), jnp.stack(wb_l), jnp.stack(bb_l),
        _pad2(wf, h_p, h_p).astype(compute_dtype),
        _pad2(tf.reshape(1, -1), 1, h_p),
        _pad2(wo, h_p, out_p).astype(compute_dtype),
        _pad2(bo.reshape(1, -1), 1, out_p),
    )

    const2 = lambda i: (0, 0)
    const3 = lambda i: (0, 0, 0)
    in_specs = [
        pl.BlockSpec((tile_n, in_p), lambda i: (i, 0)),   # x: tiled along batch
        pl.BlockSpec((in_p, h_p), const2),                # w1 (VMEM-resident)
        pl.BlockSpec((1, h_p), const2),                   # t1
        pl.BlockSpec((nb, 1, h_p), const3),               # sA
        pl.BlockSpec((nb, 1, h_p), const3),               # tA
        pl.BlockSpec((nb, h_p, hb_p), const3),            # wa
        pl.BlockSpec((nb, 1, hb_p), const3),              # tB
        pl.BlockSpec((nb, hb_p, h_p), const3),            # wb
        pl.BlockSpec((nb, 1, h_p), const3),               # bb
        pl.BlockSpec((h_p, h_p), const2),                 # wf
        pl.BlockSpec((1, h_p), const2),                   # tf
        pl.BlockSpec((h_p, out_p), const2),               # wo
        pl.BlockSpec((1, out_p), const2),                 # bo
    ]
    out_specs = pl.BlockSpec((tile_n, out_p), lambda i: (i, 0))

    flops = 2 * n_p * (in_p * h_p + nb * (h_p * hb_p + hb_p * h_p)
                       + h_p * h_p + h_p * out_p)
    bytes_accessed = int(sum(int(np.prod(a.shape)) * a.dtype.itemsize for a in args)
                         + n_p * out_p * 4)

    out = pl.pallas_call(
        head_kernel,
        out_shape=jax.ShapeDtypeStruct((n_p, out_p), x.dtype),
        grid=(pl.cdiv(n_p, tile_n),),
        in_specs=in_specs,
        out_specs=out_specs,
        compiler_params=pltpu.CompilerParams(
            dimension_semantics=("parallel",),
            vmem_limit_bytes=48 * 1024 * 1024,
        ),
        cost_estimate=pl.CostEstimate(flops=flops, transcendentals=0,
                                      bytes_accessed=bytes_accessed),
    )(*args)

    return out[:N, :out_features], None  # matches (out, None) for collect_embeddings=False


# ------------------------ deterministic params & reference -------------------

def make_head_params(key, input_size, hidden_size, output_size,
                     num_skipblocks=3, bottleneck_factor=1.0):
    H = hidden_size
    Hb = int(hidden_size * bottleneck_factor)

    def linear(k, out_f, in_f):
        kw, kb = jax.random.split(k)
        w = jax.random.normal(kw, (out_f, in_f), jnp.float32) / np.sqrt(in_f)
        b = 0.1 * jax.random.normal(kb, (out_f,), jnp.float32)
        return w, b

    def bn(k, f):
        kg, kb, km, kv = jax.random.split(k, 4)
        return {
            "g": 1.0 + 0.1 * jax.random.normal(kg, (f,), jnp.float32),
            "b": 0.1 * jax.random.normal(kb, (f,), jnp.float32),
            "m": 0.1 * jax.random.normal(km, (f,), jnp.float32),
            "v": jnp.abs(1.0 + 0.1 * jax.random.normal(kv, (f,), jnp.float32)),
        }

    keys = jax.random.split(key, 6 + num_skipblocks)
    fc1_w, fc1_b = linear(keys[0], H, input_size)
    bn1 = bn(keys[1], H)

    blocks = []
    for i in range(num_skipblocks):
        kk = jax.random.split(keys[2 + i], 8)
        bnA = bn(kk[0], H)
        v1 = jax.random.normal(kk[1], (Hb, H), jnp.float32) / np.sqrt(H)
        g1 = jnp.abs(1.0 + 0.1 * jax.random.normal(kk[2], (Hb,), jnp.float32))
        b1 = 0.1 * jax.random.normal(kk[3], (Hb,), jnp.float32)
        bnB = bn(kk[4], Hb)
        v2 = jax.random.normal(kk[5], (H, Hb), jnp.float32) / np.sqrt(Hb)
        g2 = jnp.abs(1.0 + 0.1 * jax.random.normal(kk[6], (H,), jnp.float32))
        b2 = 0.1 * jax.random.normal(kk[7], (H,), jnp.float32)
        blocks.append({
            "bnA_g": bnA["g"], "bnA_b": bnA["b"], "bnA_m": bnA["m"], "bnA_v": bnA["v"],
            "v1": v1, "g1": g1, "b1": b1,
            "bnB_g": bnB["g"], "bnB_b": bnB["b"], "bnB_m": bnB["m"], "bnB_v": bnB["v"],
            "v2": v2, "g2": g2, "b2": b2,
        })

    fcf_w, fcf_b = linear(keys[2 + num_skipblocks], H, H)
    bnf = bn(keys[3 + num_skipblocks], H)
    out_w, out_b = linear(keys[4 + num_skipblocks], output_size, H)

    return {
        "fc1_w": fc1_w, "fc1_b": fc1_b,
        "bn1_g": bn1["g"], "bn1_b": bn1["b"], "bn1_m": bn1["m"], "bn1_v": bn1["v"],
        "blocks": blocks,
        "fcf_w": fcf_w, "fcf_b": fcf_b,
        "bnf_g": bnf["g"], "bnf_b": bnf["b"], "bnf_m": bnf["m"], "bnf_v": bnf["v"],
        "out_w": out_w, "out_b": out_b,
    }


def reference_forward(x, p):
    """Pure-JAX f32 reference (eval-mode SkipConnectionRetrievalHead)."""
    def bn(h, g, b, m, v):
        return (h - m) / jnp.sqrt(v + _EPS) * g + b

    h = x @ p["fc1_w"].T + p["fc1_b"]
    h = jnp.maximum(bn(h, p["bn1_g"], p["bn1_b"], p["bn1_m"], p["bn1_v"]), 0.0)
    for blk in p["blocks"]:
        identity = h
        u = jnp.maximum(bn(h, blk["bnA_g"], blk["bnA_b"], blk["bnA_m"], blk["bnA_v"]), 0.0)
        w1 = _fold_weight_norm(blk["v1"], blk["g1"])
        h1 = u @ w1.T + blk["b1"]
        w = jnp.maximum(bn(h1, blk["bnB_g"], blk["bnB_b"], blk["bnB_m"], blk["bnB_v"]), 0.0)
        w2 = _fold_weight_norm(blk["v2"], blk["g2"])
        h2 = w @ w2.T + blk["b2"]
        h = identity + h2
    z = h @ p["fcf_w"].T + p["fcf_b"]
    z = jnp.maximum(bn(z, p["bnf_g"], p["bnf_b"], p["bnf_m"], p["bnf_v"]), 0.0)
    return z @ p["out_w"].T + p["out_b"]


if __name__ == "__main__":
    # Small shapes consistent with the module: batch=8, input=32, hidden=64, output=16
    N, IN, HID, OUT = 8, 32, 64, 16
    key = jax.random.PRNGKey(0)
    kx, kp = jax.random.split(key)
    x = jax.random.normal(kx, (N, IN), jnp.float32)
    params = make_head_params(kp, IN, HID, OUT, num_skipblocks=3, bottleneck_factor=1.0)

    out, _ = head_forward(x, params)
    out = jax.block_until_ready(out)

    ref = reference_forward(x, params)
    # Matmul inputs are bf16 (f32 MXU accumulation) -> relaxed tolerance vs f32 reference.
    np.testing.assert_allclose(np.asarray(out), np.asarray(ref), rtol=5e-2, atol=5e-2)

    # TODO(synk): training-mode BatchNorm (batch statistics), Dropout RNG, and the
    # collect_embeddings=True host-side capture path are not implemented; this kernel
    # reproduces eval()-mode forward semantics.
    print("KERNEL_OK")
</pallas_src>

<mosaic_0001>
module attributes {stable_mosaic.version = 11 : i64} {
  func.func @head_kernel(%arg0: i32, %arg1: memref<8x128xf32, #tpu.memory_space<vmem>>, %arg2: memref<128x128xbf16, #tpu.memory_space<vmem>>, %arg3: memref<1x128xf32, #tpu.memory_space<vmem>>, %arg4: memref<3x1x128xf32, #tpu.memory_space<vmem>>, %arg5: memref<3x1x128xf32, #tpu.memory_space<vmem>>, %arg6: memref<3x128x128xbf16, #tpu.memory_space<vmem>>, %arg7: memref<3x1x128xf32, #tpu.memory_space<vmem>>, %arg8: memref<3x128x128xbf16, #tpu.memory_space<vmem>>, %arg9: memref<3x1x128xf32, #tpu.memory_space<vmem>>, %arg10: memref<128x128xbf16, #tpu.memory_space<vmem>>, %arg11: memref<1x128xf32, #tpu.memory_space<vmem>>, %arg12: memref<128x128xbf16, #tpu.memory_space<vmem>>, %arg13: memref<1x128xf32, #tpu.memory_space<vmem>>, %arg14: memref<8x128xf32, #tpu.memory_space<vmem>>) attributes {dimension_semantics = [#tpu.dimension_semantics<parallel>], iteration_bounds = array<i64: 1>, scalar_prefetch = 0 : i64, scratch_operands = 0 : i64, tpu.core_type = #tpu.core_type<tc>, window_params = [{transform_indices = @transform_0, window_bounds = array<i64: 8, 128>}, {pipeline_mode = #tpu.pipeline_mode<synchronous>, transform_indices = @transform_1, window_bounds = array<i64: 128, 128>}, {pipeline_mode = #tpu.pipeline_mode<synchronous>, transform_indices = @transform_2, window_bounds = array<i64: 1, 128>}, {pipeline_mode = #tpu.pipeline_mode<synchronous>, transform_indices = @transform_3, window_bounds = array<i64: 3, 1, 128>}, {pipeline_mode = #tpu.pipeline_mode<synchronous>, transform_indices = @transform_4, window_bounds = array<i64: 3, 1, 128>}, {pipeline_mode = #tpu.pipeline_mode<synchronous>, transform_indices = @transform_5, window_bounds = array<i64: 3, 128, 128>}, {pipeline_mode = #tpu.pipeline_mode<synchronous>, transform_indices = @transform_6, window_bounds = array<i64: 3, 1, 128>}, {pipeline_mode = #tpu.pipeline_mode<synchronous>, transform_indices = @transform_7, window_bounds = array<i64: 3, 128, 128>}, {pipeline_mode = #tpu.pipeline_mode<synchronous>, transform_indices = @transform_8, window_bounds = array<i64: 3, 1, 128>}, {pipeline_mode = #tpu.pipeline_mode<synchronous>, transform_indices = @transform_9, window_bounds = array<i64: 128, 128>}, {pipeline_mode = #tpu.pipeline_mode<synchronous>, transform_indices = @transform_10, window_bounds = array<i64: 1, 128>}, {pipeline_mode = #tpu.pipeline_mode<synchronous>, transform_indices = @transform_11, window_bounds = array<i64: 128, 128>}, {pipeline_mode = #tpu.pipeline_mode<synchronous>, transform_indices = @transform_12, window_bounds = array<i64: 1, 128>}, {transform_indices = @transform_13, window_bounds = array<i64: 8, 128>}]} {
    %c0 = arith.constant 0 : index
    %c0_0 = arith.constant 0 : index
    %0 = vector.load %arg1[%c0, %c0_0] : memref<8x128xf32, #tpu.memory_space<vmem>>, vector<8x128xf32>
    %1 = arith.truncf %0 : vector<8x128xf32> to vector<8x128xbf16>
    %c0_1 = arith.constant 0 : index
    %c0_2 = arith.constant 0 : index
    %2 = vector.load %arg2[%c0_1, %c0_2] : memref<128x128xbf16, #tpu.memory_space<vmem>>, vector<128x128xbf16>
    %cst = arith.constant dense<0.000000e+00> : vector<8x128xf32>
    %3 = tpu.matmul %1, %2, %cst {dimension_numbers = #tpu.dot_dimension_numbers<[1], [0], [0], [1], [0, 0, 1, 1], [], []>} : vector<8x128xbf16>, vector<128x128xbf16>, vector<8x128xf32> -> vector<8x128xf32>
    %c0_3 = arith.constant 0 : index
    %c0_4 = arith.constant 0 : index
    %4 = vector.load %arg3[%c0_3, %c0_4] : memref<1x128xf32, #tpu.memory_space<vmem>>, vector<1x128xf32>
    %5 = vector.broadcast %4 : vector<1x128xf32> to vector<8x128xf32>
    %6 = arith.addf %3, %5 : vector<8x128xf32>
    %cst_5 = arith.constant 0.000000e+00 : f32
    %7 = vector.broadcast %cst_5 : f32 to vector<8x128xf32>
    %8 = arith.maximumf %6, %7 : vector<8x128xf32>
    %c0_6 = arith.constant 0 : index
    %c0_7 = arith.constant 0 : index
    %c0_8 = arith.constant 0 : index
    %9 = vector.load %arg4[%c0_6, %c0_7, %c0_8] : memref<3x1x128xf32, #tpu.memory_space<vmem>>, vector<1x1x128xf32>
    %10 = vector.shape_cast %9 : vector<1x1x128xf32> to vector<1x128xf32>
    %11 = vector.broadcast %10 : vector<1x128xf32> to vector<8x128xf32>
    %12 = arith.mulf %8, %11 : vector<8x128xf32>
    %c0_9 = arith.constant 0 : index
    %c0_10 = arith.constant 0 : index
    %c0_11 = arith.constant 0 : index
    %13 = vector.load %arg5[%c0_9, %c0_10, %c0_11] : memref<3x1x128xf32, #tpu.memory_space<vmem>>, vector<1x1x128xf32>
    %14 = vector.shape_cast %13 : vector<1x1x128xf32> to vector<1x128xf32>
    %15 = vector.broadcast %14 : vector<1x128xf32> to vector<8x128xf32>
    %16 = arith.addf %12, %15 : vector<8x128xf32>
    %cst_12 = arith.constant 0.000000e+00 : f32
    %17 = vector.broadcast %cst_12 : f32 to vector<8x128xf32>
    %18 = arith.maximumf %16, %17 : vector<8x128xf32>
    %19 = arith.truncf %18 : vector<8x128xf32> to vector<8x128xbf16>
    %c0_13 = arith.constant 0 : index
    %c0_14 = arith.constant 0 : index
    %c0_15 = arith.constant 0 : index
    %20 = vector.load %arg6[%c0_13, %c0_14, %c0_15] : memref<3x128x128xbf16, #tpu.memory_space<vmem>>, vector<1x128x128xbf16>
    %21 = vector.shape_cast %20 : vector<1x128x128xbf16> to vector<128x128xbf16>
    %cst_16 = arith.constant dense<0.000000e+00> : vector<8x128xf32>
    %22 = tpu.matmul %19, %21, %cst_16 {dimension_numbers = #tpu.dot_dimension_numbers<[1], [0], [0], [1], [0, 0, 1, 1], [], []>} : vector<8x128xbf16>, vector<128x128xbf16>, vector<8x128xf32> -> vector<8x128xf32>
    %c0_17 = arith.constant 0 : index
    %c0_18 = arith.constant 0 : index
    %c0_19 = arith.constant 0 : index
    %23 = vector.load %arg7[%c0_17, %c0_18, %c0_19] : memref<3x1x128xf32, #tpu.memory_space<vmem>>, vector<1x1x128xf32>
    %24 = vector.shape_cast %23 : vector<1x1x128xf32> to vector<1x128xf32>
    %25 = vector.broadcast %24 : vector<1x128xf32> to vector<8x128xf32>
    %26 = arith.addf %22, %25 : vector<8x128xf32>
    %cst_20 = arith.constant 0.000000e+00 : f32
    %27 = vector.broadcast %cst_20 : f32 to vector<8x128xf32>
    %28 = arith.maximumf %26, %27 : vector<8x128xf32>
    %29 = arith.truncf %28 : vector<8x128xf32> to vector<8x128xbf16>
    %c0_21 = arith.constant 0 : index
    %c0_22 = arith.constant 0 : index
    %c0_23 = arith.constant 0 : index
    %30 = vector.load %arg8[%c0_21, %c0_22, %c0_23] : memref<3x128x128xbf16, #tpu.memory_space<vmem>>, vector<1x128x128xbf16>
    %31 = vector.shape_cast %30 : vector<1x128x128xbf16> to vector<128x128xbf16>
    %cst_24 = arith.constant dense<0.000000e+00> : vector<8x128xf32>
    %32 = tpu.matmul %29, %31, %cst_24 {dimension_numbers = #tpu.dot_dimension_numbers<[1], [0], [0], [1], [0, 0, 1, 1], [], []>} : vector<8x128xbf16>, vector<128x128xbf16>, vector<8x128xf32> -> vector<8x128xf32>
    %33 = arith.addf %8, %32 : vector<8x128xf32>
    %c0_25 = arith.constant 0 : index
    %c0_26 = arith.constant 0 : index
    %c0_27 = arith.constant 0 : index
    %34 = vector.load %arg9[%c0_25, %c0_26, %c0_27] : memref<3x1x128xf32, #tpu.memory_space<vmem>>, vector<1x1x128xf32>
    %35 = vector.shape_cast %34 : vector<1x1x128xf32> to vector<1x128xf32>
    %36 = vector.broadcast %35 : vector<1x128xf32> to vector<8x128xf32>
    %37 = arith.addf %33, %36 : vector<8x128xf32>
    %c1 = arith.constant 1 : index
    %c0_28 = arith.constant 0 : index
    %c0_29 = arith.constant 0 : index
    %38 = vector.load %arg4[%c1, %c0_28, %c0_29] : memref<3x1x128xf32, #tpu.memory_space<vmem>>, vector<1x1x128xf32>
    %39 = vector.shape_cast %38 : vector<1x1x128xf32> to vector<1x128xf32>
    %40 = vector.broadcast %39 : vector<1x128xf32> to vector<8x128xf32>
    %41 = arith.mulf %37, %40 : vector<8x128xf32>
    %c1_30 = arith.constant 1 : index
    %c0_31 = arith.constant 0 : index
    %c0_32 = arith.constant 0 : index
    %42 = vector.load %arg5[%c1_30, %c0_31, %c0_32] : memref<3x1x128xf32, #tpu.memory_space<vmem>>, vector<1x1x128xf32>
    %43 = vector.shape_cast %42 : vector<1x1x128xf32> to vector<1x128xf32>
    %44 = vector.broadcast %43 : vector<1x128xf32> to vector<8x128xf32>
    %45 = arith.addf %41, %44 : vector<8x128xf32>
    %cst_33 = arith.constant 0.000000e+00 : f32
    %46 = vector.broadcast %cst_33 : f32 to vector<8x128xf32>
    %47 = arith.maximumf %45, %46 : vector<8x128xf32>
    %48 = arith.truncf %47 : vector<8x128xf32> to vector<8x128xbf16>
    %c1_34 = arith.constant 1 : index
    %c0_35 = arith.constant 0 : index
    %c0_36 = arith.constant 0 : index
    %49 = vector.load %arg6[%c1_34, %c0_35, %c0_36] : memref<3x128x128xbf16, #tpu.memory_space<vmem>>, vector<1x128x128xbf16>
    %50 = vector.shape_cast %49 : vector<1x128x128xbf16> to vector<128x128xbf16>
    %cst_37 = arith.constant dense<0.000000e+00> : vector<8x128xf32>
    %51 = tpu.matmul %48, %50, %cst_37 {dimension_numbers = #tpu.dot_dimension_numbers<[1], [0], [0], [1], [0, 0, 1, 1], [], []>} : vector<8x128xbf16>, vector<128x128xbf16>, vector<8x128xf32> -> vector<8x128xf32>
    %c1_38 = arith.constant 1 : index
    %c0_39 = arith.constant 0 : index
    %c0_40 = arith.constant 0 : index
    %52 = vector.load %arg7[%c1_38, %c0_39, %c0_40] : memref<3x1x128xf32, #tpu.memory_space<vmem>>, vector<1x1x128xf32>
    %53 = vector.shape_cast %52 : vector<1x1x128xf32> to vector<1x128xf32>
    %54 = vector.broadcast %53 : vector<1x128xf32> to vector<8x128xf32>
    %55 = arith.addf %51, %54 : vector<8x128xf32>
    %cst_41 = arith.constant 0.000000e+00 : f32
    %56 = vector.broadcast %cst_41 : f32 to vector<8x128xf32>
    %57 = arith.maximumf %55, %56 : vector<8x128xf32>
    %58 = arith.truncf %57 : vector<8x128xf32> to vector<8x128xbf16>
    %c1_42 = arith.constant 1 : index
    %c0_43 = arith.constant 0 : index
    %c0_44 = arith.constant 0 : index
    %59 = vector.load %arg8[%c1_42, %c0_43, %c0_44] : memref<3x128x128xbf16, #tpu.memory_space<vmem>>, vector<1x128x128xbf16>
    %60 = vector.shape_cast %59 : vector<1x128x128xbf16> to vector<128x128xbf16>
    %cst_45 = arith.constant dense<0.000000e+00> : vector<8x128xf32>
    %61 = tpu.matmul %58, %60, %cst_45 {dimension_numbers = #tpu.dot_dimension_numbers<[1], [0], [0], [1], [0, 0, 1, 1], [], []>} : vector<8x128xbf16>, vector<128x128xbf16>, vector<8x128xf32> -> vector<8x128xf32>
    %62 = arith.addf %37, %61 : vector<8x128xf32>
    %c1_46 = arith.constant 1 : index
    %c0_47 = arith.constant 0 : index
    %c0_48 = arith.constant 0 : index
    %63 = vector.load %arg9[%c1_46, %c0_47, %c0_48] : memref<3x1x128xf32, #tpu.memory_space<vmem>>, vector<1x1x128xf32>
    %64 = vector.shape_cast %63 : vector<1x1x128xf32> to vector<1x128xf32>
    %65 = vector.broadcast %64 : vector<1x128xf32> to vector<8x128xf32>
    %66 = arith.addf %62, %65 : vector<8x128xf32>
    %c2 = arith.constant 2 : index
    %c0_49 = arith.constant 0 : index
    %c0_50 = arith.constant 0 : index
    %67 = vector.load %arg4[%c2, %c0_49, %c0_50] : memref<3x1x128xf32, #tpu.memory_space<vmem>>, vector<1x1x128xf32>
    %68 = vector.shape_cast %67 : vector<1x1x128xf32> to vector<1x128xf32>
    %69 = vector.broadcast %68 : vector<1x128xf32> to vector<8x128xf32>
    %70 = arith.mulf %66, %69 : vector<8x128xf32>
    %c2_51 = arith.constant 2 : index
    %c0_52 = arith.constant 0 : index
    %c0_53 = arith.constant 0 : index
    %71 = vector.load %arg5[%c2_51, %c0_52, %c0_53] : memref<3x1x128xf32, #tpu.memory_space<vmem>>, vector<1x1x128xf32>
    %72 = vector.shape_cast %71 : vector<1x1x128xf32> to vector<1x128xf32>
    %73 = vector.broadcast %72 : vector<1x128xf32> to vector<8x128xf32>
    %74 = arith.addf %70, %73 : vector<8x128xf32>
    %cst_54 = arith.constant 0.000000e+00 : f32
    %75 = vector.broadcast %cst_54 : f32 to vector<8x128xf32>
    %76 = arith.maximumf %74, %75 : vector<8x128xf32>
    %77 = arith.truncf %76 : vector<8x128xf32> to vector<8x128xbf16>
    %c2_55 = arith.constant 2 : index
    %c0_56 = arith.constant 0 : index
    %c0_57 = arith.constant 0 : index
    %78 = vector.load %arg6[%c2_55, %c0_56, %c0_57] : memref<3x128x128xbf16, #tpu.memory_space<vmem>>, vector<1x128x128xbf16>
    %79 = vector.shape_cast %78 : vector<1x128x128xbf16> to vector<128x128xbf16>
    %cst_58 = arith.constant dense<0.000000e+00> : vector<8x128xf32>
    %80 = tpu.matmul %77, %79, %cst_58 {dimension_numbers = #tpu.dot_dimension_numbers<[1], [0], [0], [1], [0, 0, 1, 1], [], []>} : vector<8x128xbf16>, vector<128x128xbf16>, vector<8x128xf32> -> vector<8x128xf32>
    %c2_59 = arith.constant 2 : index
    %c0_60 = arith.constant 0 : index
    %c0_61 = arith.constant 0 : index
    %81 = vector.load %arg7[%c2_59, %c0_60, %c0_61] : memref<3x1x128xf32, #tpu.memory_space<vmem>>, vector<1x1x128xf32>
    %82 = vector.shape_cast %81 : vector<1x1x128xf32> to vector<1x128xf32>
    %83 = vector.broadcast %82 : vector<1x128xf32> to vector<8x128xf32>
    %84 = arith.addf %80, %83 : vector<8x128xf32>
    %cst_62 = arith.constant 0.000000e+00 : f32
    %85 = vector.broadcast %cst_62 : f32 to vector<8x128xf32>
    %86 = arith.maximumf %84, %85 : vector<8x128xf32>
    %87 = arith.truncf %86 : vector<8x128xf32> to vector<8x128xbf16>
    %c2_63 = arith.constant 2 : index
    %c0_64 = arith.constant 0 : index
    %c0_65 = arith.constant 0 : index
    %88 = vector.load %arg8[%c2_63, %c0_64, %c0_65] : memref<3x128x128xbf16, #tpu.memory_space<vmem>>, vector<1x128x128xbf16>
    %89 = vector.shape_cast %88 : vector<1x128x128xbf16> to vector<128x128xbf16>
    %cst_66 = arith.constant dense<0.000000e+00> : vector<8x128xf32>
    %90 = tpu.matmul %87, %89, %cst_66 {dimension_numbers = #tpu.dot_dimension_numbers<[1], [0], [0], [1], [0, 0, 1, 1], [], []>} : vector<8x128xbf16>, vector<128x128xbf16>, vector<8x128xf32> -> vector<8x128xf32>
    %91 = arith.addf %66, %90 : vector<8x128xf32>
    %c2_67 = arith.constant 2 : index
    %c0_68 = arith.constant 0 : index
    %c0_69 = arith.constant 0 : index
    %92 = vector.load %arg9[%c2_67, %c0_68, %c0_69] : memref<3x1x128xf32, #tpu.memory_space<vmem>>, vector<1x1x128xf32>
    %93 = vector.shape_cast %92 : vector<1x1x128xf32> to vector<1x128xf32>
    %94 = vector.broadcast %93 : vector<1x128xf32> to vector<8x128xf32>
    %95 = arith.addf %91, %94 : vector<8x128xf32>
    %96 = arith.truncf %95 : vector<8x128xf32> to vector<8x128xbf16>
    %c0_70 = arith.constant 0 : index
    %c0_71 = arith.constant 0 : index
    %97 = vector.load %arg10[%c0_70, %c0_71] : memref<128x128xbf16, #tpu.memory_space<vmem>>, vector<128x128xbf16>
    %cst_72 = arith.constant dense<0.000000e+00> : vector<8x128xf32>
    %98 = tpu.matmul %96, %97, %cst_72 {dimension_numbers = #tpu.dot_dimension_numbers<[1], [0], [0], [1], [0, 0, 1, 1], [], []>} : vector<8x128xbf16>, vector<128x128xbf16>, vector<8x128xf32> -> vector<8x128xf32>
    %c0_73 = arith.constant 0 : index
    %c0_74 = arith.constant 0 : index
    %99 = vector.load %arg11[%c0_73, %c0_74] : memref<1x128xf32, #tpu.memory_space<vmem>>, vector<1x128xf32>
    %100 = vector.broadcast %99 : vector<1x128xf32> to vector<8x128xf32>
    %101 = arith.addf %98, %100 : vector<8x128xf32>
    %cst_75 = arith.constant 0.000000e+00 : f32
    %102 = vector.broadcast %cst_75 : f32 to vector<8x128xf32>
    %103 = arith.maximumf %101, %102 : vector<8x128xf32>
    %104 = arith.truncf %103 : vector<8x128xf32> to vector<8x128xbf16>
    %c0_76 = arith.constant 0 : index
    %c0_77 = arith.constant 0 : index
    %105 = vector.load %arg12[%c0_76, %c0_77] : memref<128x128xbf16, #tpu.memory_space<vmem>>, vector<128x128xbf16>
    %cst_78 = arith.constant dense<0.000000e+00> : vector<8x128xf32>
    %106 = tpu.matmul %104, %105, %cst_78 {dimension_numbers = #tpu.dot_dimension_numbers<[1], [0], [0], [1], [0, 0, 1, 1], [], []>} : vector<8x128xbf16>, vector<128x128xbf16>, vector<8x128xf32> -> vector<8x128xf32>
    %c0_79 = arith.constant 0 : index
    %c0_80 = arith.constant 0 : index
    %107 = vector.load %arg13[%c0_79, %c0_80] : memref<1x128xf32, #tpu.memory_space<vmem>>, vector<1x128xf32>
    %108 = vector.broadcast %107 : vector<1x128xf32> to vector<8x128xf32>
    %109 = arith.addf %106, %108 : vector<8x128xf32>
    %c0_81 = arith.constant 0 : index
    %c0_82 = arith.constant 0 : index
    %110 = vector.load %arg14[%c0_81, %c0_82] : memref<8x128xf32, #tpu.memory_space<vmem>>, vector<8x128xf32>
    tpu.vector_store %arg14[%c0_81, %c0_82], %109 {strides = array<i32>} : memref<8x128xf32, #tpu.memory_space<vmem>>, vector<8x128xf32>,
    return
  }
  func.func @transform_0(%arg0: i32) -> (i32, i32) {
    %c0_i32 = arith.constant 0 : i32
    %c0_i32_0 = arith.constant 0 : i32
    return %arg0, %c0_i32 : i32, i32
  }
  func.func @transform_1(%arg0: i32) -> (i32, i32) {
    %c0_i32 = arith.constant 0 : i32
    %c0_i32_0 = arith.constant 0 : i32
    %c0_i32_1 = arith.constant 0 : i32
    return %c0_i32, %c0_i32_0 : i32, i32
  }
  func.func @transform_2(%arg0: i32) -> (i32, i32) {
    %c0_i32 = arith.constant 0 : i32
    %c0_i32_0 = arith.constant 0 : i32
    %c0_i32_1 = arith.constant 0 : i32
    return %c0_i32, %c0_i32_0 : i32, i32
  }
  func.func @transform_3(%arg0: i32) -> (i32, i32, i32) {
    %c0_i32 = arith.constant 0 : i32
    %c0_i32_0 = arith.constant 0 : i32
    %c0_i32_1 = arith.constant 0 : i32
    %c0_i32_2 = arith.constant 0 : i32
    return %c0_i32, %c0_i32_0, %c0_i32_1 : i32, i32, i32
  }
  func.func @transform_4(%arg0: i32) -> (i32, i32, i32) {
    %c0_i32 = arith.constant 0 : i32
    %c0_i32_0 = arith.constant 0 : i32
    %c0_i32_1 = arith.constant 0 : i32
    %c0_i32_2 = arith.constant 0 : i32
    return %c0_i32, %c0_i32_0, %c0_i32_1 : i32, i32, i32
  }
  func.func @transform_5(%arg0: i32) -> (i32, i32, i32) {
    %c0_i32 = arith.constant 0 : i32
    %c0_i32_0 = arith.constant 0 : i32
    %c0_i32_1 = arith.constant 0 : i32
    %c0_i32_2 = arith.constant 0 : i32
    return %c0_i32, %c0_i32_0, %c0_i32_1 : i32, i32, i32
  }
  func.func @transform_6(%arg0: i32) -> (i32, i32, i32) {
    %c0_i32 = arith.constant 0 : i32
    %c0_i32_0 = arith.constant 0 : i32
    %c0_i32_1 = arith.constant 0 : i32
    %c0_i32_2 = arith.constant 0 : i32
    return %c0_i32, %c0_i32_0, %c0_i32_1 : i32, i32, i32
  }
  func.func @transform_7(%arg0: i32) -> (i32, i32, i32) {
    %c0_i32 = arith.constant 0 : i32
    %c0_i32_0 = arith.constant 0 : i32
    %c0_i32_1 = arith.constant 0 : i32
    %c0_i32_2 = arith.constant 0 : i32
    return %c0_i32, %c0_i32_0, %c0_i32_1 : i32, i32, i32
  }
  func.func @transform_8(%arg0: i32) -> (i32, i32, i32) {
    %c0_i32 = arith.constant 0 : i32
    %c0_i32_0 = arith.constant 0 : i32
    %c0_i32_1 = arith.constant 0 : i32
    %c0_i32_2 = arith.constant 0 : i32
    return %c0_i32, %c0_i32_0, %c0_i32_1 : i32, i32, i32
  }
  func.func @transform_9(%arg0: i32) -> (i32, i32) {
    %c0_i32 = arith.constant 0 : i32
    %c0_i32_0 = arith.constant 0 : i32
    %c0_i32_1 = arith.constant 0 : i32
    return %c0_i32, %c0_i32_0 : i32, i32
  }
  func.func @transform_10(%arg0: i32) -> (i32, i32) {
    %c0_i32 = arith.constant 0 : i32
    %c0_i32_0 = arith.constant 0 : i32
    %c0_i32_1 = arith.constant 0 : i32
    return %c0_i32, %c0_i32_0 : i32, i32
  }
  func.func @transform_11(%arg0: i32) -> (i32, i32) {
    %c0_i32 = arith.constant 0 : i32
    %c0_i32_0 = arith.constant 0 : i32
    %c0_i32_1 = arith.constant 0 : i32
    return %c0_i32, %c0_i32_0 : i32, i32
  }
  func.func @transform_12(%arg0: i32) -> (i32, i32) {
    %c0_i32 = arith.constant 0 : i32
    %c0_i32_0 = arith.constant 0 : i32
    %c0_i32_1 = arith.constant 0 : i32
    return %c0_i32, %c0_i32_0 : i32, i32
  }
  func.func @transform_13(%arg0: i32) -> (i32, i32) {
    %c0_i32 = arith.constant 0 : i32
    %c0_i32_0 = arith.constant 0 : i32
    return %arg0, %c0_i32 : i32, i32
  }
}

</mosaic_0001>

<bundles_post_ra>
// kernel: tpu_custom_call.1
= control target key start
LH: loop header
LB: loop body
LE: loop exit
PB: predicated region body
PF: predicated region fallthrough
CT: control target
= control target key end

     0   :  { %18 = vsyncpa [#allocation3], 0  ;;  %s2161_s0 = inlined_call_operand.hbm [shape: f32[8,128], index: 0, kind: input, shape index: {}]   ;;  %s2162_s1 = inlined_call_operand.hbm [shape: bf16[128,128], index: 1, kind: input, shape index: {}]   ;;  %s2163_s2 = inlined_call_operand.vmem [shape: f32[1,128], index: 2, kind: input, shape index: {}]   ;;  %s2164_s3 = inlined_call_operand.vmem [shape: f32[3,1,128], index: 3, kind: input, shape index: {}]   ;;  %s2165_s4 = inlined_call_operand.vmem [shape: f32[3,1,128], index: 4, kind: input, shape index: {}]   ;;  %s2166_s5 = inlined_call_operand.hbm [shape: bf16[3,128,128], index: 5, kind: input, shape index: {}]   ;;  %s2167_s6 = inlined_call_operand.vmem [shape: f32[3,1,128], index: 6, kind: input, shape index: {}]   ;;  %s2168_s7 = inlined_call_operand.hbm [shape: bf16[3,128,128], index: 7, kind: input, shape index: {}]   ;;  %s2169_s8 = inlined_call_operand.vmem [shape: f32[3,1,128], index: 8, kind: input, shape index: {}]   ;;  %s2170_s9 = inlined_call_operand.hbm [shape: bf16[128,128], index: 9, kind: input, shape index: {}]   ;;  %s2171_s10 = inlined_call_operand.vmem [shape: f32[1,128], index: 10, kind: input, shape index: {}]   ;;  %s2172_s11 = inlined_call_operand.hbm [shape: bf16[128,128], index: 11, kind: input, shape index: {}]   ;;  %s2173_s12 = inlined_call_operand.vmem [shape: f32[1,128], index: 12, kind: input, shape index: {}]   ;;  %s2174_s13 = inlined_call_operand.hbm [shape: f32[8,128], index: 13, kind: output, shape index: {}]  }
   0x1   :  { %19 = vsyncpa [#allocation6], 0 }
   0x2   :  { %20 = vsyncpa [#allocation9], 0 }
   0x3   :  { %21 = vsyncpa [#allocation12], 0 }
   0x4   :  { %22 = vsyncpa [#allocation4], 0  ;;  %s1831_s25 = smov [#allocation5]   ;;  %s1667_s29 = scalar_lea.hbm %s2162_s1, 1024 }
   0x5   :  { %s38_s26 = sshll.u32 %s1831_s25, 4  ;;  %p1668_p0 = scmp.ne.s32.totalorder %s2162_s1, %s1667_s29  ;;  %s39_s26 = int_to_ptr.vmem [resolvable:$true] %s38_s26 }
   0x6   :  { %p1671_p1 = scmp.lt.u32.totalorder %s1667_s29, %s2162_s1 }
   0x8   :  { %p1673_p2 = pnand %p1671_p1, %p1668_p0 }
   0xa   :  { %1676 = shalt.err (!%p1673_p2)
}
   0xb   :  { %s1677_s17 = scalar_lea.vmem %s39_s26, 1024  ;;  %p1682_p4 = scmp.lt.s32.totalorder %s39_s26, %s39_s26 }
   0xc   :  { %p1678_p3 = scmp.ne.s32.totalorder %s39_s26, %s1677_s17  ;;  %p1683_p5 = scmp.lt.s32.totalorder %s1677_s17, %s1677_s17 }
   0xe   :  { %p1684_p6 = por %p1683_p5, %p1682_p4 }
  0x10   :  { %p1685_p7 = pnand %p1684_p6, %p1678_p3 }
  0x12   :  { %1688 = shalt.err (!%p1685_p7)
}
  0x13   :  { %s1832_s18 = smov 64   ;;  %s1833_s19 = smov 4  }
  0x14   :  { %44 = dma.hbm_to_vmem [thread:$0]  %s2162_s1, 1024, %s39_s26, [#allocation6], %s1832_s18, %s1832_s18, %s1833_s19  }
  0x15   :  { %s1834_s22 = smov [#allocation8]   ;;  %s1835_s24 = smov [#allocation2]  }
  0x16   :  { %s70_s23 = sshll.u32 %s1834_s22, 4  ;;  %s29_s25 = sshll.u32 %s1835_s24, 4  ;;  %s71_s23 = int_to_ptr.vmem [resolvable:$true] %s70_s23  ;;  %s30_s25 = int_to_ptr.vmem [resolvable:$true] %s29_s25 }
  0x17   :  { %s1689_s29 = scalar_lea.hbm %s2168_s7, 3072 }
  0x18   :  { %p1690_p8 = scmp.ne.s32.totalorder %s2168_s7, %s1689_s29  ;;  %p1693_p9 = scmp.lt.u32.totalorder %s1689_s29, %s2168_s7 }
  0x1a   :  { %p1695_p10 = pnand %p1693_p9, %p1690_p8 }
  0x1c   :  { %1698 = shalt.err (!%p1695_p10)
}
  0x1d   :  { %s1699_s1 = scalar_lea.vmem %s71_s23, 3072  ;;  %p1704_p12 = scmp.lt.s32.totalorder %s71_s23, %s71_s23 }
  0x1e   :  { %p1700_p11 = scmp.ne.s32.totalorder %s71_s23, %s1699_s1  ;;  %p1705_p13 = scmp.lt.s32.totalorder %s1699_s1, %s1699_s1 }
  0x20   :  { %p1706_p0 = por %p1705_p13, %p1704_p12 }
  0x22   :  { %p1707_p1 = pnand %p1706_p0, %p1700_p11 }
  0x24   :  { %1710 = shalt.err (!%p1707_p1)
}
  0x25   :  { %76 = dma.hbm_to_vmem [thread:$0]  %s2168_s7, 3072, %s71_s23, [#allocation9], %s1832_s18, %s1832_s18, %s1833_s19  }
  0x26   :  { %s1711_s22 = scalar_lea.hbm %s2161_s0, 128 }
  0x27   :  { %p1712_p2 = scmp.ne.s32.totalorder %s2161_s0, %s1711_s22  ;;  %p1715_p3 = scmp.lt.u32.totalorder %s1711_s22, %s2161_s0 }
  0x29   :  { %p1717_p4 = pnand %p1715_p3, %p1712_p2 }
  0x2b   :  { %1720 = shalt.err (!%p1717_p4)
}
  0x2c   :  { %s1721_s30 = scalar_lea.vmem %s30_s25, 128  ;;  %p1726_p6 = scmp.lt.s32.totalorder %s30_s25, %s30_s25 }
  0x2d   :  { %p1722_p5 = scmp.ne.s32.totalorder %s30_s25, %s1721_s30  ;;  %p1727_p7 = scmp.lt.s32.totalorder %s1721_s30, %s1721_s30 }
  0x2f   :  { %p1728_p8 = por %p1727_p7, %p1726_p6 }
  0x31   :  { %p1729_p9 = pnand %p1728_p8, %p1722_p5 }
  0x33   :  { %1732 = shalt.err (!%p1729_p9)
}
  0x34   :  { %32 = dma.hbm_to_vmem [thread:$0]  %s2161_s0, 128, %s30_s25, [#allocation3]  }
  0x35   :  { %s1836_s14 = smov [#allocation7]   ;;  %s1837_s16 = smov [#allocation10]  }
  0x36   :  { %s56_s15 = sshll.u32 %s1836_s14, 4  ;;  %s84_s1 = sshll.u32 %s1837_s16, 4  ;;  %s57_s15 = int_to_ptr.vmem [resolvable:$true] %s56_s15  ;;  %s85_s1 = int_to_ptr.vmem [resolvable:$true] %s84_s1 }
  0x37   :  { %s1733_s20 = scalar_lea.hbm %s2166_s5, 3072 }
  0x38   :  { %p1734_p10 = scmp.ne.s32.totalorder %s2166_s5, %s1733_s20  ;;  %p1737_p11 = scmp.lt.u32.totalorder %s1733_s20, %s2166_s5 }
  0x3a   :  { %p1739_p12 = pnand %p1737_p11, %p1734_p10 }
  0x3c   :  { %1742 = shalt.err (!%p1739_p12)
}
  0x3d   :  { %s1743_s0 = scalar_lea.vmem %s57_s15, 3072  ;;  %p1748_p0 = scmp.lt.s32.totalorder %s57_s15, %s57_s15 }
  0x3e   :  { %p1744_p13 = scmp.ne.s32.totalorder %s57_s15, %s1743_s0  ;;  %p1749_p1 = scmp.lt.s32.totalorder %s1743_s0, %s1743_s0 }
  0x40   :  { %p1750_p2 = por %p1749_p1, %p1748_p0 }
  0x42   :  { %p1751_p3 = pnand %p1750_p2, %p1744_p13 }
  0x44   :  { %1754 = shalt.err (!%p1751_p3)
}
  0x45   :  { %62 = dma.hbm_to_vmem [thread:$0]  %s2166_s5, 3072, %s57_s15, [#allocation6], %s1832_s18, %s1832_s18, %s1833_s19  }
  0x46   :  { %s1755_s7 = scalar_lea.hbm %s2170_s9, 1024 }
  0x47   :  { %p1756_p4 = scmp.ne.s32.totalorder %s2170_s9, %s1755_s7  ;;  %p1759_p5 = scmp.lt.u32.totalorder %s1755_s7, %s2170_s9 }
  0x49   :  { %p1761_p6 = pnand %p1759_p5, %p1756_p4 }
  0x4b   :  { %1764 = shalt.err (!%p1761_p6)
}
  0x4c   :  { %s1765_s17 = scalar_lea.vmem %s85_s1, 1024  ;;  %p1770_p8 = scmp.lt.s32.totalorder %s85_s1, %s85_s1 }
  0x4d   :  { %p1766_p7 = scmp.ne.s32.totalorder %s85_s1, %s1765_s17  ;;  %p1771_p9 = scmp.lt.s32.totalorder %s1765_s17, %s1765_s17 }
  0x4f   :  { %p1772_p10 = por %p1771_p9, %p1770_p8 }
  0x51   :  { %p1773_p11 = pnand %p1772_p10, %p1766_p7 }
  0x53   :  { %1776 = shalt.err (!%p1773_p11)
}
  0x54   :  { %90 = dma.hbm_to_vmem [thread:$0]  %s2170_s9, 1024, %s85_s1, [#allocation9], %s1832_s18, %s1832_s18, %s1833_s19  }
  0x55   :  { %s1838_s20 = smov [#allocation11]   ;;  %s1777_s27 = scalar_lea.hbm %s2172_s11, 1024 }
  0x56   :  { %s98_s21 = sshll.u32 %s1838_s20, 4  ;;  %p1778_p12 = scmp.ne.s32.totalorder %s2172_s11, %s1777_s27  ;;  %s99_s21 = int_to_ptr.vmem [resolvable:$true] %s98_s21 }
  0x57   :  { %p1781_p13 = scmp.lt.u32.totalorder %s1777_s27, %s2172_s11 }
  0x59   :  { %p1783_p0 = pnand %p1781_p13, %p1778_p12 }
  0x5b   :  { %1786 = shalt.err (!%p1783_p0)
}
  0x5c   :  { %s1787_s30 = scalar_lea.vmem %s99_s21, 1024  ;;  %p1792_p2 = scmp.lt.s32.totalorder %s99_s21, %s99_s21 }
  0x5d   :  { %p1788_p1 = scmp.ne.s32.totalorder %s99_s21, %s1787_s30  ;;  %p1793_p3 = scmp.lt.s32.totalorder %s1787_s30, %s1787_s30 }
  0x5f   :  { %p1794_p4 = por %p1793_p3, %p1792_p2 }
  0x61   :  { %p1795_p5 = pnand %p1794_p4, %p1788_p1 }
  0x63   :  { %1798 = shalt.err (!%p1795_p5)
}
  0x64   :  { %104 = dma.hbm_to_vmem [thread:$0]  %s2172_s11, 1024, %s99_s21, [#allocation12], %s1832_s18, %s1832_s18, %s1833_s19  }
  0x65   :  { %1821 = dma.done.wait [#allocation3], 128  }
  0x66   :  { %1822 = vsyncadd [#allocation3], 4294967168 }
  0x67   :  { %1823 = dma.done.wait [#allocation6], 4096  }
  0x68   :  { %1824 = vsyncadd [#allocation6], 4294963200 }
  0x69   :  { %1825 = dma.done.wait [#allocation9], 4096  }
  0x6a   :  { %1826 = vsyncadd [#allocation9], 4294963200 }
  0x6b   :  { %1827 = dma.done.wait [#allocation12], 1024  }
  0x6c   :  { %1828 = vsyncadd [#allocation12], 4294966272  ;;  %v1839_v0 = vmov 0.0   ;;  %vm1840_vm0 = vmmov 0   ;;  %v1595_v1 = vld [vmem:[#allocation5] sm:$0xff]   ;;  %v1596_v2 = vld [vmem:[#allocation5 + $0x8] sm:$0xff]  }
  0x6d   :  { %1404 = vmatprep.subr.bf16.mxu0 %v1839_v0  ;;  %1420 = vmatprep.mubr.msk.bf16.mxu0 %vm1840_vm0, %v1839_v0  ;;  %v1597_v3 = vld [vmem:[#allocation5 + $0x10] sm:$0xff]   ;;  %v1603_v4 = vld [vmem:[#allocation7] sm:$0xff]   ;;  %v1598_v5 = vld [vmem:[#allocation5 + $0x18] sm:$0xff]   ;;  %s1841_s19 = smov [#allocation13]  }
  0x6e   :  { %1424 = vmatprep.subr.bf16.mxu1 %v1839_v0  ;;  %1440 = vmatprep.mubr.msk.bf16.mxu1 %vm1840_vm0, %v1839_v0  ;;  %v1604_v6 = vld [vmem:[#allocation7 + $0x8] sm:$0xff]   ;;  %v1599_v7 = vld [vmem:[#allocation5 + $0x20] sm:$0xff]   ;;  %v1605_v8 = vld [vmem:[#allocation7 + $0x10] sm:$0xff]   ;;  %s1216_s7 = sshll.u32 %s1841_s19, 4  ;;  %s1217_s7 = int_to_ptr.vmem [resolvable:$true] %s1216_s7 }
  0x6f   :  { %1405 = vmatpush3.bf16.msra.mxu0 %v1595_v1  ;;  %1425 = vmatpush3.bf16.msra.mxu1 %v1603_v4  ;;  %v1600_v9 = vld [vmem:[#allocation5 + $0x28] sm:$0xff]   ;;  %v1606_v10 = vld [vmem:[#allocation7 + $0x18] sm:$0xff]   ;;  %v1601_v11 = vld [vmem:[#allocation5 + $0x30] sm:$0xff]   ;;  %p1804_p7 = scmp.lt.s32.totalorder %s1217_s7, %s1217_s7 }
  0x70   :  { %1406 = vmatprep.subr.bf16.mxu0 %v1839_v0  ;;  %1426 = vmatprep.subr.bf16.mxu1 %v1839_v0  ;;  %v1607_v12 = vld [vmem:[#allocation7 + $0x20] sm:$0xff]   ;;  %v1602_v13 = vld [vmem:[#allocation5 + $0x38] sm:$0xff]   ;;  %v1608_v16 = vld [vmem:[#allocation7 + $0x28] sm:$0xff]  }
  0x71   :  { %v126_v14 = vld [vmem:[#allocation2] sm:$0xff]  ;;  %v1609_v17 = vld [vmem:[#allocation7 + $0x30] sm:$0xff]   ;;  %v1611_v19 = vld [vmem:[#allocation8] sm:$0xff]  }
  0x72   :  { %v127_v15 = vpack.c.bf16 %v126_v14, %v126_v14  ;;  %v1610_v18 = vld [vmem:[#allocation7 + $0x38] sm:$0xff]   ;;  %v1612_v20 = vld [vmem:[#allocation8 + $0x8] sm:$0xff]   ;;  %v1613_v21 = vld [vmem:[#allocation8 + $0x10] sm:$0xff]  }
  0x73   :  { %1407 = vmatpush3.bf16.msra.mxu0 %v1596_v2  ;;  %1427 = vmatpush3.bf16.msra.mxu1 %v1604_v6  ;;  %v1614_v22 = vld [vmem:[#allocation8 + $0x18] sm:$0xff]   ;;  %v1615_v23 = vld [vmem:[#allocation8 + $0x20] sm:$0xff]   ;;  %v1616_v24 = vld [vmem:[#allocation8 + $0x28] sm:$0xff]  }
  0x74   :  { %1408 = vmatprep.subr.bf16.mxu0 %v1839_v0  ;;  %1428 = vmatprep.subr.bf16.mxu1 %v1839_v0  ;;  %v1228_v25 = vld [vmem:[%s2163_s2] ss:$0 sm:$0xff]  ;;  %v1617_v38 = vld [vmem:[#allocation8 + $0x30] sm:$0xff]   ;;  %v1619_v40 = vld [vmem:[#allocation7 + $0x40] sm:$0xff]  }
  0x75   :  { %v1237_v29 = vld [vmem:[%s2164_s3] ss:$0 sm:$0xff]  ;;  %v1620_v41 = vld [vmem:[#allocation7 + $0x48] sm:$0xff]   ;;  %v1621_v42 = vld [vmem:[#allocation7 + $0x50] sm:$0xff]  }
  0x76   :  { %v1238_v33 = vld [vmem:[%s2165_s4] ss:$0 sm:$0xff]  ;;  %v1623_v44 = vld [vmem:[#allocation7 + $0x60] sm:$0xff]   ;;  %v1624_v53 = vld [vmem:[#allocation7 + $0x68] sm:$0xff]  }
  0x77   :  { %1409 = vmatpush3.bf16.msra.mxu0 %v1597_v3  ;;  %1429 = vmatpush3.bf16.msra.mxu1 %v1605_v8  ;;  %v1618_v39 = vld [vmem:[#allocation8 + $0x38] sm:$0xff]   ;;  %v1625_v54 = vld [vmem:[#allocation7 + $0x70] sm:$0xff]   ;;  %v1627_v56 = vld [vmem:[#allocation8 + $0x40] sm:$0xff]  }
  0x78   :  { %1410 = vmatprep.subr.bf16.mxu0 %v1839_v0  ;;  %1430 = vmatprep.subr.bf16.mxu1 %v1839_v0  ;;  %v1622_v43 = vld [vmem:[#allocation7 + $0x58] sm:$0xff]   ;;  %v1628_v57 = vld [vmem:[#allocation8 + $0x48] sm:$0xff]   ;;  %v1629_v58 = vld [vmem:[#allocation8 + $0x50] sm:$0xff]  }
  0x79   :  { %v1239_v45 = vld [vmem:[%s2167_s6] ss:$0 sm:$0xff]  ;;  %v1631_v60 = vld [vmem:[#allocation8 + $0x60] sm:$0xff]   ;;  %v1632_v61 = vld [vmem:[#allocation8 + $0x68] sm:$0xff]  }
  0x7a   :  { %v1626_v55 = vld [vmem:[#allocation7 + $0x78] sm:$0xff]   ;;  %v1635_v14 = vld [vmem:[#allocation7 + $0x80] sm:$0xff]  }
  0x7b   :  { %1411 = vmatpush3.bf16.msra.mxu0 %v1598_v5  ;;  %1431 = vmatpush3.bf16.msra.mxu1 %v1606_v10  ;;  %v1630_v59 = vld [vmem:[#allocation8 + $0x58] sm:$0xff]  }
  0x7c   :  { %1412 = vmatprep.subr.bf16.mxu0 %v1839_v0  ;;  %1432 = vmatprep.subr.bf16.mxu1 %v1839_v0  ;;  %v1256_v63 = vld [vmem:[%s2169_s8] ss:$0 sm:$0xff]  ;;  %v1258_v3 = vld [vmem:[%s2164_s3 + $0x1] ss:$0 sm:$0xff] }
  0x7f   :  { %1413 = vmatpush3.bf16.msra.mxu0 %v1599_v7  ;;  %1433 = vmatpush3.bf16.msra.mxu1 %v1607_v12  ;;  %v1260_v7 = vld [vmem:[%s2165_s4 + $0x1] ss:$0 sm:$0xff]  ;;  %v1633_v12 = vld [vmem:[#allocation8 + $0x70] sm:$0xff]  }
  0x80   :  { %1414 = vmatprep.subr.bf16.mxu0 %v1839_v0  ;;  %1434 = vmatprep.subr.bf16.mxu1 %v1839_v0 }
  0x83   :  { %1415 = vmatpush3.bf16.msra.mxu0 %v1600_v9  ;;  %1435 = vmatpush3.bf16.msra.mxu1 %v1608_v16  ;;  %v1637_v16 = vld [vmem:[#allocation7 + $0x90] sm:$0xff]  }
  0x84   :  { %1416 = vmatprep.subr.bf16.mxu0 %v1839_v0  ;;  %1436 = vmatprep.subr.bf16.mxu1 %v1839_v0 }
  0x87   :  { %1417 = vmatpush3.bf16.msra.mxu0 %v1601_v11  ;;  %1437 = vmatpush3.bf16.msra.mxu1 %v1609_v17  ;;  %v1638_v17 = vld [vmem:[#allocation7 + $0x98] sm:$0xff]  }
  0x88   :  { %1418 = vmatprep.subr.bf16.mxu0 %v1839_v0  ;;  %1438 = vmatprep.subr.bf16.mxu1 %v1839_v0 }
  0x8b   :  { %1419 = vmatpush3.bf16.msra.mxu0 %v1602_v13  ;;  %1439 = vmatpush3.bf16.msra.mxu1 %v1610_v18  ;;  %v1634_v13 = vld [vmem:[#allocation8 + $0x78] sm:$0xff]   ;;  %v1639_v18 = vld [vmem:[#allocation7 + $0xa0] sm:$0xff]  }
  0x8c   :  { %1444 = vmatprep.subr.bf16.mxu0 %v1839_v0  ;;  %1464 = vmatprep.subr.bf16.mxu1 %v1839_v0 }
  0x8e   :  { %1421 = vmatmul.mubr.bf16.vlgmr.msra.gmra.mrb[0].mxu0 %v127_v15  ;;  %v1636_v15 = vld [vmem:[#allocation7 + $0x88] sm:$0xff]  }
  0x8f   :  { %1460 = vmatprep.mubr.msk.bf16.mxu0 %vm1840_vm0, %v1839_v0  ;;  %1445 = vmatpush3.bf16.msra.mxu0 %v1611_v19  ;;  %v1262_v19 = vld [vmem:[%s2167_s6 + $0x1] ss:$0 sm:$0xff] }
  0x90   :  { %1446 = vmatprep.subr.bf16.mxu0 %v1839_v0 }
  0x93   :  { %1447 = vmatpush3.bf16.msra.mxu0 %v1612_v20 }
  0x94   :  { %1448 = vmatprep.subr.bf16.mxu0 %v1839_v0 }
  0x97   :  { %1449 = vmatpush3.bf16.msra.mxu0 %v1613_v21 }
  0x98   :  { %1450 = vmatprep.subr.bf16.mxu0 %v1839_v0 }
  0x9b   :  { %1451 = vmatpush3.bf16.msra.mxu0 %v1614_v22 }
  0x9c   :  { %1452 = vmatprep.subr.bf16.mxu0 %v1839_v0 }
  0x9f   :  { %1453 = vmatpush3.bf16.msra.mxu0 %v1615_v23 }
  0xa0   :  { %1454 = vmatprep.subr.bf16.mxu0 %v1839_v0 }
  0xa3   :  { %1455 = vmatpush3.bf16.msra.mxu0 %v1616_v24 }
  0xa4   :  { %1456 = vmatprep.subr.bf16.mxu0 %v1839_v0 }
  0xa7   :  { %1457 = vmatpush3.bf16.msra.mxu0 %v1617_v38 }
  0xa8   :  { %1458 = vmatprep.subr.bf16.mxu0 %v1839_v0 }
  0xab   :  { %1459 = vmatpush3.bf16.msra.mxu0 %v1618_v39 }
  0xac   :  { %1484 = vmatprep.subr.bf16.mxu0 %v1839_v0 }
 0x161   :  { %v233_v26 = vpop.f32.mrb[0].mxu0 }
 0x162   :  { %v2032_v27 = vadd.f32 %v1228_v25, %v233_v26  ;;  %v1422_v28 = vpop.f32.mrb[1].mxu0 }
 0x163   :  { %v236_v30 = vpop.f32.mrb[2].mxu0  ;;  %v1641_v28 = vld [vmem:[#allocation7 + $0xb0] sm:$0xff]  }
 0x164   :  { %v239_v31 = vmax.f32 %v2032_v27, 0.0  ;;  %v1423_v32 = vpop.f32.mrb[3].mxu0  ;;  %v1640_v27 = vld [vmem:[#allocation7 + $0xa8] sm:$0xff]   ;;  %v1643_v30 = vld [vmem:[#allocation8 + $0x80] sm:$0xff]  }
 0x165   :  { %v1645_v32 = vld [vmem:[#allocation8 + $0x90] sm:$0xff]  }
 0x166   :  { %v247_v34 = vmul.f32 %v1237_v29, %v239_v31  ;;  %v1642_v29 = vld [vmem:[#allocation7 + $0xb8] sm:$0xff]  }
 0x168   :  { %v255_v35 = vadd.f32 %v1238_v33, %v247_v34  ;;  %v1646_v33 = vld [vmem:[#allocation8 + $0x98] sm:$0xff]   ;;  %v1647_v34 = vld [vmem:[#allocation8 + $0xa0] sm:$0xff]  }
 0x16a   :  { %v256_v36 = vmax.f32 %v255_v35, 0.0  ;;  %v1648_v35 = vld [vmem:[#allocation8 + $0xa8] sm:$0xff]  }
 0x16c   :  { %v257_v37 = vpack.c.bf16 %v256_v36, %v256_v36 }
 0x16e   :  { %1441 = vmatmul.mubr.bf16.vlgmr.msra.gmra.mrb[0].mxu1 %v257_v37  ;;  %v1280_v37 = vld [vmem:[%s2169_s8 + $0x1] ss:$0 sm:$0xff] }
 0x16f   :  { %1480 = vmatprep.mubr.msk.bf16.mxu1 %vm1840_vm0, %v1839_v0  ;;  %1465 = vmatpush3.bf16.msra.mxu1 %v1619_v40  ;;  %v1282_v40 = vld [vmem:[%s2164_s3 + $0x2] ss:$0 sm:$0xff] }
 0x170   :  { %1466 = vmatprep.subr.bf16.mxu1 %v1839_v0 }
 0x173   :  { %1467 = vmatpush3.bf16.msra.mxu1 %v1620_v41 }
 0x174   :  { %1468 = vmatprep.subr.bf16.mxu1 %v1839_v0 }
 0x177   :  { %1469 = vmatpush3.bf16.msra.mxu1 %v1621_v42 }
 0x178   :  { %1470 = vmatprep.subr.bf16.mxu1 %v1839_v0 }
 0x17b   :  { %1471 = vmatpush3.bf16.msra.mxu1 %v1622_v43 }
 0x17c   :  { %1472 = vmatprep.subr.bf16.mxu1 %v1839_v0 }
 0x17f   :  { %1473 = vmatpush3.bf16.msra.mxu1 %v1623_v44  ;;  %v1284_v44 = vld [vmem:[%s2165_s4 + $0x2] ss:$0 sm:$0xff] }
 0x180   :  { %1474 = vmatprep.subr.bf16.mxu1 %v1839_v0 }
 0x183   :  { %1475 = vmatpush3.bf16.msra.mxu1 %v1624_v53  ;;  %v1653_v53 = vld [vmem:[#allocation10 + $0x10] sm:$0xff]  }
 0x184   :  { %1476 = vmatprep.subr.bf16.mxu1 %v1839_v0 }
 0x187   :  { %1477 = vmatpush3.bf16.msra.mxu1 %v1625_v54  ;;  %v1654_v54 = vld [vmem:[#allocation10 + $0x18] sm:$0xff]  }
 0x188   :  { %1478 = vmatprep.subr.bf16.mxu1 %v1839_v0 }
 0x18b   :  { %1479 = vmatpush3.bf16.msra.mxu1 %v1626_v55  ;;  %v1655_v55 = vld [vmem:[#allocation10 + $0x20] sm:$0xff]  }
 0x18c   :  { %1504 = vmatprep.subr.bf16.mxu1 %v1839_v0 }
 0x241   :  { %v363_v46 = vpop.f32.mrb[0].mxu1 }
 0x242   :  { %v364_v47 = vadd.f32 %v1239_v45, %v363_v46  ;;  %v1442_v48 = vpop.f32.mrb[1].mxu1 }
 0x243   :  { %v366_v49 = vpop.f32.mrb[2].mxu1 }
 0x244   :  { %v369_v50 = vmax.f32 %v364_v47, 0.0  ;;  %v1443_v51 = vpop.f32.mrb[3].mxu1  ;;  %v1649_v49 = vld [vmem:[#allocation8 + $0xb0] sm:$0xff]  }
 0x245   :  { %v1651_v51 = vld [vmem:[#allocation10] sm:$0xff]  }
 0x246   :  { %v370_v52 = vpack.c.bf16 %v369_v50, %v369_v50  ;;  %v1650_v50 = vld [vmem:[#allocation8 + $0xb8] sm:$0xff]  }
 0x248   :  { %1461 = vmatmul.mubr.bf16.vlgmr.msra.gmra.mrb[4].mxu0 %v370_v52  ;;  %v1652_v52 = vld [vmem:[#allocation10 + $0x8] sm:$0xff]  }
 0x249   :  { %1500 = vmatprep.mubr.msk.bf16.mxu0 %vm1840_vm0, %v1839_v0  ;;  %1485 = vmatpush3.bf16.msra.mxu0 %v1627_v56  ;;  %v1656_v56 = vld [vmem:[#allocation10 + $0x28] sm:$0xff]  }
 0x24a   :  { %1486 = vmatprep.subr.bf16.mxu0 %v1839_v0 }
 0x24d   :  { %1487 = vmatpush3.bf16.msra.mxu0 %v1628_v57  ;;  %v1286_v57 = vld [vmem:[%s2167_s6 + $0x2] ss:$0 sm:$0xff] }
 0x24e   :  { %1488 = vmatprep.subr.bf16.mxu0 %v1839_v0 }
 0x251   :  { %1489 = vmatpush3.bf16.msra.mxu0 %v1629_v58 }
 0x252   :  { %1490 = vmatprep.subr.bf16.mxu0 %v1839_v0 }
 0x255   :  { %1491 = vmatpush3.bf16.msra.mxu0 %v1630_v59 }
 0x256   :  { %1492 = vmatprep.subr.bf16.mxu0 %v1839_v0 }
 0x259   :  { %1493 = vmatpush3.bf16.msra.mxu0 %v1631_v60 }
 0x25a   :  { %1494 = vmatprep.subr.bf16.mxu0 %v1839_v0 }
 0x25d   :  { %1495 = vmatpush3.bf16.msra.mxu0 %v1632_v61 }
 0x25e   :  { %1496 = vmatprep.subr.bf16.mxu0 %v1839_v0 }
 0x261   :  { %1497 = vmatpush3.bf16.msra.mxu0 %v1633_v12 }
 0x262   :  { %1498 = vmatprep.subr.bf16.mxu0 %v1839_v0 }
 0x265   :  { %1499 = vmatpush3.bf16.msra.mxu0 %v1634_v13 }
 0x266   :  { %1524 = vmatprep.subr.bf16.mxu0 %v1839_v0 }
 0x31b   :  { %v469_v62 = vpop.f32.mrb[4].mxu0 }
 0x31c   :  { %v475_v1 = vadd.f32 %v469_v62, %v239_v31  ;;  %v1462_v2 = vpop.f32.mrb[5].mxu0  ;;  %v1644_v31 = vld [vmem:[#allocation8 + $0x88] sm:$0xff]  }
 0x31d   :  { %v472_v4 = vpop.f32.mrb[6].mxu0  ;;  %v1657_v2 = vld [vmem:[#allocation10 + $0x30] sm:$0xff]  }
 0x31e   :  { %v2074_v5 = vadd.f32 %v1256_v63, %v475_v1  ;;  %v1463_v6 = vpop.f32.mrb[7].mxu0  ;;  %v1659_v4 = vld [vmem:[#allocation11] sm:$0xff]  }
 0x31f   :  { %v1661_v6 = vld [vmem:[#allocation11 + $0x10] sm:$0xff]  }
 0x320   :  { %v492_v8 = vmul.f32 %v1258_v3, %v2074_v5  ;;  %v1658_v3 = vld [vmem:[#allocation10 + $0x38] sm:$0xff]  }
 0x322   :  { %v501_v9 = vadd.f32 %v1260_v7, %v492_v8  ;;  %v1662_v7 = vld [vmem:[#allocation11 + $0x18] sm:$0xff]   ;;  %v1663_v8 = vld [vmem:[#allocation11 + $0x20] sm:$0xff]  }
 0x324   :  { %v502_v10 = vmax.f32 %v501_v9, 0.0  ;;  %v1664_v9 = vld [vmem:[#allocation11 + $0x28] sm:$0xff]  }
 0x326   :  { %v503_v11 = vpack.c.bf16 %v502_v10, %v502_v10 }
 0x328   :  { %1481 = vmatmul.mubr.bf16.vlgmr.msra.gmra.mrb[4].mxu1 %v503_v11  ;;  %v1304_v11 = vld [vmem:[%s2169_s8 + $0x2] ss:$0 sm:$0xff] }
 0x329   :  { %1520 = vmatprep.mubr.msk.bf16.mxu1 %vm1840_vm0, %v1839_v0  ;;  %1505 = vmatpush3.bf16.msra.mxu1 %v1635_v14 }
 0x32a   :  { %1506 = vmatprep.subr.bf16.mxu1 %v1839_v0 }
 0x32d   :  { %1507 = vmatpush3.bf16.msra.mxu1 %v1636_v15 }
 0x32e   :  { %1508 = vmatprep.subr.bf16.mxu1 %v1839_v0 }
 0x331   :  { %1509 = vmatpush3.bf16.msra.mxu1 %v1637_v16 }
 0x332   :  { %1510 = vmatprep.subr.bf16.mxu1 %v1839_v0 }
 0x335   :  { %1511 = vmatpush3.bf16.msra.mxu1 %v1638_v17 }
 0x336   :  { %1512 = vmatprep.subr.bf16.mxu1 %v1839_v0 }
 0x339   :  { %1513 = vmatpush3.bf16.msra.mxu1 %v1639_v18  ;;  %v1665_v18 = vld [vmem:[#allocation11 + $0x30] sm:$0xff]  }
 0x33a   :  { %1514 = vmatprep.subr.bf16.mxu1 %v1839_v0 }
 0x33d   :  { %1515 = vmatpush3.bf16.msra.mxu1 %v1640_v27 }
 0x33e   :  { %1516 = vmatprep.subr.bf16.mxu1 %v1839_v0 }
 0x341   :  { %1517 = vmatpush3.bf16.msra.mxu1 %v1641_v28  ;;  %v1314_v28 = vld [vmem:[%s2173_s12] ss:$0 sm:$0xff] }
 0x342   :  { %1518 = vmatprep.subr.bf16.mxu1 %v1839_v0 }
 0x345   :  { %1519 = vmatpush3.bf16.msra.mxu1 %v1642_v29 }
 0x346   :  { %1544 = vmatprep.subr.bf16.mxu1 %v1839_v0 }
 0x3fb   :  { %v611_v20 = vpop.f32.mrb[4].mxu1 }
 0x3fc   :  { %v612_v21 = vadd.f32 %v1262_v19, %v611_v20  ;;  %v1482_v22 = vpop.f32.mrb[5].mxu1  ;;  %v1666_v19 = vld [vmem:[#allocation11 + $0x38] sm:$0xff]  }
 0x3fd   :  { %v614_v23 = vpop.f32.mrb[6].mxu1  ;;  %v1305_v20 = vld [vmem:[%s2171_s10] ss:$0 sm:$0xff]  ;;  %s1799_s10 = scalar_lea.vmem %s1217_s7, 128 }
 0x3fe   :  { %v617_v24 = vmax.f32 %v612_v21, 0.0  ;;  %v1483_v25 = vpop.f32.mrb[7].mxu1  ;;  %p1800_p6 = scmp.ne.s32.totalorder %s1217_s7, %s1799_s10  ;;  %p1805_p8 = scmp.lt.s32.totalorder %s1799_s10, %s1799_s10 }
 0x400   :  { %v618_v26 = vpack.c.bf16 %v617_v24, %v617_v24  ;;  %p1806_p9 = por %p1805_p8, %p1804_p7 }
 0x402   :  { %1501 = vmatmul.mubr.bf16.vlgmr.msra.gmra.mrb[8].mxu0 %v618_v26  ;;  %p1807_p10 = pnand %p1806_p9, %p1800_p6 }
 0x403   :  { %1540 = vmatprep.mubr.msk.bf16.mxu0 %vm1840_vm0, %v1839_v0  ;;  %1525 = vmatpush3.bf16.msra.mxu0 %v1643_v30 }
 0x404   :  { %1526 = vmatprep.subr.bf16.mxu0 %v1839_v0 }
 0x407   :  { %1527 = vmatpush3.bf16.msra.mxu0 %v1644_v31 }
 0x408   :  { %1528 = vmatprep.subr.bf16.mxu0 %v1839_v0 }
 0x40b   :  { %1529 = vmatpush3.bf16.msra.mxu0 %v1645_v32 }
 0x40c   :  { %1530 = vmatprep.subr.bf16.mxu0 %v1839_v0 }
 0x40f   :  { %1531 = vmatpush3.bf16.msra.mxu0 %v1646_v33 }
 0x410   :  { %1532 = vmatprep.subr.bf16.mxu0 %v1839_v0 }
 0x413   :  { %1533 = vmatpush3.bf16.msra.mxu0 %v1647_v34 }
 0x414   :  { %1534 = vmatprep.subr.bf16.mxu0 %v1839_v0 }
 0x417   :  { %1535 = vmatpush3.bf16.msra.mxu0 %v1648_v35 }
 0x418   :  { %1536 = vmatprep.subr.bf16.mxu0 %v1839_v0 }
 0x41b   :  { %1537 = vmatpush3.bf16.msra.mxu0 %v1649_v49 }
 0x41c   :  { %1538 = vmatprep.subr.bf16.mxu0 %v1839_v0 }
 0x41f   :  { %1539 = vmatpush3.bf16.msra.mxu0 %v1650_v50 }
 0x420   :  { %1564 = vmatprep.subr.bf16.mxu0 %v1839_v0 }
 0x4d5   :  { %v718_v36 = vpop.f32.mrb[8].mxu0 }
 0x4d6   :  { %v724_v38 = vadd.f32 %v718_v36, %v2074_v5  ;;  %v1502_v39 = vpop.f32.mrb[9].mxu0  ;;  %v1660_v5 = vld [vmem:[#allocation11 + $0x8] sm:$0xff]  }
 0x4d7   :  { %v721_v41 = vpop.f32.mrb[10].mxu0 }
 0x4d8   :  { %v2110_v42 = vadd.f32 %v1280_v37, %v724_v38  ;;  %v1503_v43 = vpop.f32.mrb[11].mxu0 }
 0x4da   :  { %v742_v45 = vmul.f32 %v1282_v40, %v2110_v42 }
 0x4dc   :  { %v751_v46 = vadd.f32 %v1284_v44, %v742_v45 }
 0x4de   :  { %v752_v47 = vmax.f32 %v751_v46, 0.0 }
 0x4e0   :  { %v753_v48 = vpack.c.bf16 %v752_v47, %v752_v47 }
 0x4e2   :  { %1521 = vmatmul.mubr.bf16.vlgmr.msra.gmra.mrb[8].mxu1 %v753_v48 }
 0x4e3   :  { %1560 = vmatprep.mubr.msk.bf16.mxu1 %vm1840_vm0, %v1839_v0  ;;  %1545 = vmatpush3.bf16.msra.mxu1 %v1651_v51 }
 0x4e4   :  { %1546 = vmatprep.subr.bf16.mxu1 %v1839_v0 }
 0x4e7   :  { %1547 = vmatpush3.bf16.msra.mxu1 %v1652_v52 }
 0x4e8   :  { %1548 = vmatprep.subr.bf16.mxu1 %v1839_v0 }
 0x4eb   :  { %1549 = vmatpush3.bf16.msra.mxu1 %v1653_v53 }
 0x4ec   :  { %1550 = vmatprep.subr.bf16.mxu1 %v1839_v0 }
 0x4ef   :  { %1551 = vmatpush3.bf16.msra.mxu1 %v1654_v54 }
 0x4f0   :  { %1552 = vmatprep.subr.bf16.mxu1 %v1839_v0 }
 0x4f3   :  { %1553 = vmatpush3.bf16.msra.mxu1 %v1655_v55 }
 0x4f4   :  { %1554 = vmatprep.subr.bf16.mxu1 %v1839_v0 }
 0x4f7   :  { %1555 = vmatpush3.bf16.msra.mxu1 %v1656_v56 }
 0x4f8   :  { %1556 = vmatprep.subr.bf16.mxu1 %v1839_v0 }
 0x4fb   :  { %1557 = vmatpush3.bf16.msra.mxu1 %v1657_v2 }
 0x4fc   :  { %1558 = vmatprep.subr.bf16.mxu1 %v1839_v0 }
 0x4ff   :  { %1559 = vmatpush3.bf16.msra.mxu1 %v1658_v3 }
 0x5b5   :  { %v861_v58 = vpop.f32.mrb[8].mxu1 }
 0x5b6   :  { %v862_v59 = vadd.f32 %v1286_v57, %v861_v58  ;;  %v1522_v60 = vpop.f32.mrb[9].mxu1 }
 0x5b7   :  { %v864_v61 = vpop.f32.mrb[10].mxu1 }
 0x5b8   :  { %v867_v62 = vmax.f32 %v862_v59, 0.0  ;;  %v1523_v63 = vpop.f32.mrb[11].mxu1 }
 0x5ba   :  { %v868_v1 = vpack.c.bf16 %v867_v62, %v867_v62 }
 0x5bc   :  { %1541 = vmatmul.mubr.bf16.vlgmr.msra.gmra.mrb[12].mxu0 %v868_v1 }
 0x5bd   :  { %1580 = vmatprep.mubr.msk.bf16.mxu0 %vm1840_vm0, %v1839_v0  ;;  %1565 = vmatpush3.bf16.msra.mxu0 %v1659_v4 }
 0x5be   :  { %1566 = vmatprep.subr.bf16.mxu0 %v1839_v0 }
 0x5c1   :  { %1567 = vmatpush3.bf16.msra.mxu0 %v1660_v5 }
 0x5c2   :  { %1568 = vmatprep.subr.bf16.mxu0 %v1839_v0 }
 0x5c5   :  { %1569 = vmatpush3.bf16.msra.mxu0 %v1661_v6 }
 0x5c6   :  { %1570 = vmatprep.subr.bf16.mxu0 %v1839_v0 }
 0x5c9   :  { %1571 = vmatpush3.bf16.msra.mxu0 %v1662_v7 }
 0x5ca   :  { %1572 = vmatprep.subr.bf16.mxu0 %v1839_v0 }
 0x5cd   :  { %1573 = vmatpush3.bf16.msra.mxu0 %v1663_v8 }
 0x5ce   :  { %1574 = vmatprep.subr.bf16.mxu0 %v1839_v0 }
 0x5d1   :  { %1575 = vmatpush3.bf16.msra.mxu0 %v1664_v9 }
 0x5d2   :  { %1576 = vmatprep.subr.bf16.mxu0 %v1839_v0 }
 0x5d5   :  { %1577 = vmatpush3.bf16.msra.mxu0 %v1665_v18 }
 0x5d6   :  { %1578 = vmatprep.subr.bf16.mxu0 %v1839_v0 }
 0x5d9   :  { %1579 = vmatpush3.bf16.msra.mxu0 %v1666_v19 }
 0x68f   :  { %v968_v10 = vpop.f32.mrb[12].mxu0 }
 0x690   :  { %v974_v12 = vadd.f32 %v968_v10, %v2110_v42  ;;  %v1542_v13 = vpop.f32.mrb[13].mxu0 }
 0x691   :  { %v971_v14 = vpop.f32.mrb[14].mxu0 }
 0x692   :  { %v983_v15 = vadd.f32 %v1304_v11, %v974_v12  ;;  %v1543_v16 = vpop.f32.mrb[15].mxu0 }
 0x694   :  { %v984_v17 = vpack.c.bf16 %v983_v15, %v983_v15 }
 0x696   :  { %1561 = vmatmul.mubr.bf16.vlgmr.msra.gmra.mrb[12].mxu1 %v984_v17 }
 0x769   :  { %v1090_v21 = vpop.f32.mrb[12].mxu1 }
 0x76a   :  { %v1091_v22 = vadd.f32 %v1305_v20, %v1090_v21  ;;  %v1562_v23 = vpop.f32.mrb[13].mxu1 }
 0x76b   :  { %v1093_v24 = vpop.f32.mrb[14].mxu1 }
 0x76c   :  { %v1096_v25 = vmax.f32 %v1091_v22, 0.0  ;;  %v1563_v26 = vpop.f32.mrb[15].mxu1 }
 0x76e   :  { %v1097_v27 = vpack.c.bf16 %v1096_v25, %v1096_v25 }
 0x770   :  { %1581 = vmatmul.mubr.bf16.vlgmr.msra.gmra.mrb[16].mxu0 %v1097_v27 }
 0x843   :  { %v1203_v0 = vpop.f32.mrb[16].mxu0 }
 0x844   :  { %v1204_v29 = vadd.f32 %v1314_v28, %v1203_v0  ;;  %v1582_v30 = vpop.f32.mrb[17].mxu0 }
 0x845   :  { %v1206_v31 = vpop.f32.mrb[18].mxu0 }
 0x846   :  { %1209 = vst [vmem:[#allocation13] sm:$0xff] %v1204_v29  ;;  %v1583_v32 = vpop.f32.mrb[19].mxu0 }
 0x847   :  { %1810 = shalt.err (!%p1807_p10)
}
 0x848   :  { %s1811_s12 = scalar_lea.hbm %s2174_s13, 128 }
 0x849   :  { %p1812_p11 = scmp.ne.s32.totalorder %s2174_s13, %s1811_s12  ;;  %p1815_p12 = scmp.lt.u32.totalorder %s1811_s12, %s2174_s13 }
 0x84b   :  { %p1817_p13 = pnand %p1815_p12, %p1812_p11 }
 0x84d   :  { %1820 = shalt.err (!%p1817_p13)
}
 0x84e   :  { %1219 = dma.vmem_to_hbm [thread:$0]  %s1217_s7, 128, %s2174_s13, [#allocation4]  }
 0x84f   :  { %1829 = dma.done.wait [#allocation4], 128  }
 0x850   :  { %1830 = vsyncadd [#allocation4], 4294967168 }
 0x851   :  { %1223 = vsyncpa [#allocation3], 1 }
 0x852   :  { %1224 = vsyncpa [#allocation6], 1 }
 0x853   :  { %1225 = vsyncpa [#allocation9], 1 }
 0x854   :  { %1226 = vsyncpa [#allocation12], 1 }
 0x855   :  { %1227 = vsyncpa [#allocation4], 1 }

</bundles_post_ra>
